<compile_context>
chip_gen: v7x
topology: tpu7x:2x2x1
jax: 0.10.0
libtpu: 0.0.40
codegen_flags: <defaults>
</compile_context>

<pallas_src>
import functools
import math

import jax
import jax.numpy as jnp
from jax import lax
from jax.experimental import pallas as pl
from jax.experimental.pallas import tpu as pltpu


def _embedding_swish_kernel(idx_ref, tab_ref, o_ref, *, approx_sigmoid):
    # idx_ref: (tm, 1) int32   tab_ref: (V_pad, H) f32   o_ref: (tm, H)
    idx = idx_ref[...]                                   # (tm, 1)
    tab = tab_ref[...]                                   # (V_pad, H)
    tm = idx.shape[0]
    v_pad = tab.shape[0]

    # One-hot gather on the MXU: (tm, V_pad) @ (V_pad, H) -> (tm, H).
    # Garbage indices in a ragged final block just select an arbitrary (or
    # zero) row; those output rows are masked on store, so correctness holds.
    lane = lax.broadcasted_iota(jnp.int32, (tm, v_pad), 1)
    onehot = (lane == idx).astype(tab.dtype)
    emb = jnp.dot(onehot, tab, preferred_element_type=jnp.float32)

    # swish(z) = z * sigmoid(z); |z| <= sqrt(3) so the naive formula is safe
    # (exp goes to the EUP slot).
    denom = 1.0 + jnp.exp(-emb)
    if approx_sigmoid:
        # EUP approx reciprocal (~2^-12 rel err) — frees the VALU divide chain
        # that can become the binding slot on v7x.
        sig = pl.reciprocal(denom, approx=True)
    else:
        sig = 1.0 / denom
    o_ref[...] = (emb * sig).astype(o_ref.dtype)


def embedding_block_pallas(x_idx, emb_weight, *, block_rows=1024,
                           approx_sigmoid=False, out_dtype=jnp.float32):
    """y = swish(emb_weight[x_idx]) computed in a Pallas TPU kernel.

    x_idx:      (N,) integer indices in [0, V)
    emb_weight: (V, H) float embedding table
    returns:    (N, H) array of dtype `out_dtype`
    """
    x_idx = x_idx.astype(jnp.int32)
    emb_weight = emb_weight.astype(jnp.float32)

    n = x_idx.shape[0]
    v, h = emb_weight.shape

    # Pad vocab rows to a multiple of 128 so the one-hot matmul feeds the MXU
    # with an aligned K dimension (one-off, <= 128 extra rows).
    v_pad = ((v + 127) // 128) * 128
    if v_pad != v:
        emb_weight = jnp.pad(emb_weight, ((0, v_pad - v), (0, 0)))

    # Row tile: multiple of 8 sublanes, capped at block_rows, and sized so the
    # grid has at least 2 steps when N is moderate (so the "parallel" axis can
    # be sharded across both v7x TensorCores).  No N padding: the ragged final
    # block is masked by Pallas.
    half_rounded = ((pl.cdiv(n, 2) + 7) // 8) * 8
    tm = max(8, min(block_rows, half_rounded))
    grid = (pl.cdiv(n, tm),)

    idx2d = x_idx.reshape(n, 1)

    kernel = functools.partial(_embedding_swish_kernel,
                               approx_sigmoid=approx_sigmoid)

    return pl.pallas_call(
        kernel,
        out_shape=jax.ShapeDtypeStruct((n, h), out_dtype),
        grid_spec=pltpu.PrefetchScalarGridSpec(
            num_scalar_prefetch=0,
            grid=grid,
            in_specs=[
                pl.BlockSpec((tm, 1), lambda i: (i, 0)),       # index tile
                pl.BlockSpec((v_pad, h), lambda i: (0, 0)),    # table, VMEM-resident
            ],
            out_specs=pl.BlockSpec((tm, h), lambda i: (i, 0)),
        ),
        compiler_params=pltpu.CompilerParams(
            dimension_semantics=("parallel",),
        ),
    )(idx2d, emb_weight)


if __name__ == "__main__":
    key = jax.random.PRNGKey(0)
    k_idx, k_w = jax.random.split(key)

    hidden_channels = 256
    vocab = 95
    n_atoms = 19   # deliberately not a tile multiple: exercises the masked ragged block

    # Matches EmbeddingBlock.reset_parameters: weight ~ U(-sqrt(3), sqrt(3))
    a = math.sqrt(3.0)
    emb_weight = jax.random.uniform(
        k_w, (vocab, hidden_channels), minval=-a, maxval=a, dtype=jnp.float32
    )
    x = jax.random.randint(k_idx, (n_atoms,), 0, vocab, dtype=jnp.int32)

    y = embedding_block_pallas(x, emb_weight)
    jax.block_until_ready(y)

    # Reference: swish(emb(x)) in plain JAX (exact path, f32).
    e = emb_weight[x]
    y_ref = e * (1.0 / (1.0 + jnp.exp(-e)))
    assert y.shape == (n_atoms, hidden_channels)
    assert jnp.allclose(y, y_ref, atol=1e-5, rtol=1e-5)

    print("KERNEL_OK")
</pallas_src>

<mosaic_0001>
module attributes {stable_mosaic.version = 11 : i64} {
  func.func @_embedding_swish_kernel(%arg0: i32, %arg1: memref<16x1xi32, #tpu.memory_space<vmem>>, %arg2: memref<128x256xf32, #tpu.memory_space<vmem>>, %arg3: memref<16x256xf32, #tpu.memory_space<vmem>>) attributes {dimension_semantics = [#tpu.dimension_semantics<parallel>], iteration_bounds = array<i64: 2>, scalar_prefetch = 0 : i64, scratch_operands = 0 : i64, tpu.core_type = #tpu.core_type<tc>, window_params = [{transform_indices = @transform_0, window_bounds = array<i64: 16, 1>}, {pipeline_mode = #tpu.pipeline_mode<synchronous>, transform_indices = @transform_1, window_bounds = array<i64: 128, 256>}, {transform_indices = @transform_2, window_bounds = array<i64: 16, 256>}]} {
    %c0 = arith.constant 0 : index
    %c0_0 = arith.constant 0 : index
    %0 = vector.load %arg1[%c0, %c0_0] : memref<16x1xi32, #tpu.memory_space<vmem>>, vector<16x1xi32>
    %c0_1 = arith.constant 0 : index
    %c0_2 = arith.constant 0 : index
    %1 = vector.load %arg2[%c0_1, %c0_2] : memref<128x256xf32, #tpu.memory_space<vmem>>, vector<128x256xf32>
    %2 = tpu.iota {dimensions = array<i32: 1>} : vector<16x128xi32>
    %3 = vector.broadcast %0 : vector<16x1xi32> to vector<16x128xi32>
    %4 = arith.cmpi eq, %2, %3 : vector<16x128xi32>
    %5 = arith.extui %4 : vector<16x128xi1> to vector<16x128xi32>
    %6 = arith.sitofp %5 : vector<16x128xi32> to vector<16x128xf32>
    %cst = arith.constant dense<0.000000e+00> : vector<16x256xf32>
    %7 = tpu.matmul %6, %1, %cst {dimension_numbers = #tpu.dot_dimension_numbers<[1], [0], [0], [1], [0, 0, 1, 1], [], []>} : vector<16x128xf32>, vector<128x256xf32>, vector<16x256xf32> -> vector<16x256xf32>
    %cst_3 = arith.constant 0.000000e+00 : f32
    %8 = vector.broadcast %cst_3 : f32 to vector<16x256xf32>
    %9 = arith.subf %8, %7 : vector<16x256xf32>
    %10 = math.exp %9 : vector<16x256xf32>
    %cst_4 = arith.constant 1.000000e+00 : f32
    %11 = vector.broadcast %cst_4 : f32 to vector<16x256xf32>
    %12 = arith.addf %11, %10 : vector<16x256xf32>
    %cst_5 = arith.constant 1.000000e+00 : f32
    %13 = vector.broadcast %cst_5 : f32 to vector<16x256xf32>
    %14 = arith.divf %13, %12 : vector<16x256xf32>
    %15 = arith.mulf %7, %14 : vector<16x256xf32>
    %c0_6 = arith.constant 0 : index
    %c0_7 = arith.constant 0 : index
    %16 = vector.load %arg3[%c0_6, %c0_7] : memref<16x256xf32, #tpu.memory_space<vmem>>, vector<16x256xf32>
    tpu.vector_store %arg3[%c0_6, %c0_7], %15 {strides = array<i32>} : memref<16x256xf32, #tpu.memory_space<vmem>>, vector<16x256xf32>,
    return
  }
  func.func @transform_0(%arg0: i32) -> (i32, i32) {
    %c0_i32 = arith.constant 0 : i32
    %c0_i32_0 = arith.constant 0 : i32
    return %arg0, %c0_i32 : i32, i32
  }
  func.func @transform_1(%arg0: i32) -> (i32, i32) {
    %c0_i32 = arith.constant 0 : i32
    %c0_i32_0 = arith.constant 0 : i32
    %c0_i32_1 = arith.constant 0 : i32
    return %c0_i32, %c0_i32_0 : i32, i32
  }
  func.func @transform_2(%arg0: i32) -> (i32, i32) {
    %c0_i32 = arith.constant 0 : i32
    %c0_i32_0 = arith.constant 0 : i32
    return %arg0, %c0_i32 : i32, i32
  }
}

</mosaic_0001>

<bundles_post_ra>
// kernel: tpu_custom_call.1
= control target key start
LH: loop header
LB: loop body
LE: loop exit
PB: predicated region body
PF: predicated region fallthrough
CT: control target
= control target key end

     0   :  { %7 = vsyncpa [#allocation3], 0  ;;  %s862_s0 = inlined_call_operand.vmem [shape: s32[19,1], index: 0, kind: input, shape index: {}]   ;;  %s863_s1 = inlined_call_operand.hbm [shape: f32[128,256], index: 1, kind: input, shape index: {}]   ;;  %s864_s2 = inlined_call_operand.hbm [shape: f32[19,256], index: 2, kind: output, shape index: {}]  }
   0x1   :  { %8 = vsyncpa [#allocation4], 0 }
   0x2   :  { %10 = vsyncpa [#allocation4 + $0x1], 0  ;;  %s706_s9 = smov 0   ;;  %s708_s10 = smov 0  }
   0x3   :  { %s710_s11 = smov 0   ;;  %s712_s12 = smov 0  }
   0x4 LB: > { %s727_s13 = sadd.s32 4294967295, %s680_s12   ;;  %s438_s14 = sadd.s32 4294967294, %s680_s12   ;;  %s680_s12 = sphi %s712_s12, %s879_s12   ;;  %s676_s11 = sphi %s710_s11, %s878_s11   ;;  %s672_s10 = sphi %s708_s10, %s877_s10   ;;  %s668_s9 = sphi %s706_s9, %s876_s9  }
   0x5   : > { %s731_s15 = sadd.s32 1, %s680_s12   ;;  %s70_s16 = sadd.s32 1, %s676_s11 }
   0x6   : > { %s67_s17 = ssub.s32 %s680_s12, %s731_s15  ;;  %p80_p0 = scmp.ne.s32.totalorder %s676_s11, %s672_s10 }
   0x7   : > { %p68_p1 = scmp.eq.s32.totalorder %s67_s17, 0  ;;  %p81_p2 = scmp.eq.s32.totalorder %s727_s13, 1 }
   0x8   : > { %p86_p3 = scmp.ne.s32.totalorder %s672_s10, %s668_s9  ;;  %p87_p4 = scmp.eq.s32.totalorder %s438_s14, 1 }
   0x9   : > { %s742_s18 = scalar_select %p68_p1, %s676_s11, %s70_s16  }
   0xa   : > { %p744_p5 = por %p81_p2, %p80_p0  ;;  %p748_p6 = por %p87_p4, %p86_p3 }
   0xb   : > { %p439_p7 = scmp.ge.s32.totalorder %s680_s12, 1  ;;  %p94_p8 = scmp.lt.s32.totalorder %s680_s12, 3 }
   0xc   : > { %s867_s19 = scalar_select %p744_p5, 1, 0 }
   0xd   : > { %s868_s20 = scalar_select %p748_p6, 1, 0 }
   0xe   : > { %p865_p9 = scmp.eq.s32.totalorder %s727_s13, 0  ;;  %p755_p10 = pnand %p439_p7, %p94_p8 }
   0xf   : > { %s682_s22 = smov [#allocation2]   ;;  %s586_s27 = scalar_lea.hbm %s863_s1, 4096 }
  0x10   : > { %s869_s21 = scalar_select %p755_p10, 1, 0 }
  0x11   : > { %s106_s23 = sshll.u32 %s682_s22, 4  ;;  %p518_p11 = pneg %p755_p10  ;;  %s107_s23 = int_to_ptr.vmem [resolvable:$true] %s106_s23 }
  0x12   : > { %p587_p13 = scmp.ne.s32.totalorder %s863_s1, %s586_s27  ;;  %p593_p3 = scmp.lt.u32.totalorder %s586_s27, %s863_s1 }
  0x13   : > { %p763_p12 = pnand %p865_p9, %p518_p11 }
  0x15   : > { %p588_p0 = pneg %p763_p12 }
  0x17   : > { %p589_p1 = pnand %p588_p0, %p587_p13 }
  0x19   : > { %p590_p2 = pneg %p589_p1 }
  0x1b   : > { %p595_p4 = pnand %p593_p3, %p590_p2 }
  0x1d   : > { %598 = shalt.err (!%p595_p4)
}
  0x1e   : > { %s599_s4 = scalar_lea.vmem %s107_s23, 4096  ;;  %p607_p9 = scmp.lt.s32.totalorder %s107_s23, %s107_s23 }
  0x1f   : > { %p600_p7 = scmp.ne.s32.totalorder %s107_s23, %s599_s4  ;;  %p608_p6 = scmp.lt.s32.totalorder %s599_s4, %s599_s4 }
  0x21   : > { %p602_p8 = pnand %p600_p7, %p588_p0  ;;  %p609_p5 = por %p608_p6, %p607_p9 }
  0x23   : > { %p603_p11 = pneg %p602_p8 }
  0x25   : > { %p610_p10 = pnand %p609_p5, %p603_p11 }
  0x27   : > { %613 = shalt.err (!%p610_p10)
}
  0x28   : > { %s683_s5 = smov 256   ;;  %s684_s6 = smov 16  }
  0x29   : > { %521 = dma.hbm_to_vmem [thread:$0]  (!%p763_p12), %s863_s1, 4096, %s107_s23, [#allocation3], %s683_s5, %s683_s5, %s684_s6  }
  0x2a   : > { %p871_p13 = scmp.ne.s32.totalorder %s869_s21, 0 }
  0x2b   : > { %p872_p1 = scmp.eq.s32.totalorder (!%p871_p13), %s727_s13, 0 }
  0x2c   : > { %139 = sbr.rel (%p871_p13) target bundleno = 465 (0x1d1), region = 28 }
  0x33   : > { %659 = dma.done.wait (%p872_p1), [#allocation3], 4096   ;;  %p873_p0 = pmov %p872_p1 }
  0x34   : > { %s790_s14 = sshll.u32 %s727_s13, 1  ;;  %v685_v0 = vmov 0   ;;  %v188_v3 = vld [vmem:[#allocation2 + $0x8] sm:$0xff]  ;;  %v190_v4 = vld [vmem:[#allocation2 + $0x18] sm:$0xff]  ;;  %v187_v5 = vld [vmem:[#allocation2] sm:$0xff]  ;;  %v686_v7 = vmov 0.0   ;;  %v219_v52 = vlaneseq }
  0x35   : > { %661 = vsyncadd (%p873_p0), [#allocation3], 4294963200  ;;  %569 = vset.pattern.permute.xlu0 %v685_v0  ;;  %p170_p5 = scmp.lt.s32.totalorder %s790_s14, 2  ;;  %v189_v6 = vld [vmem:[#allocation2 + $0x10] sm:$0xff]  ;;  %297 = vmatprep.mubr.f32.mxu0 %v686_v7  ;;  %v465_v8 = vpack.c.bf16 %v190_v4, %v188_v3  ;;  %v192_v10 = vld [vmem:[#allocation2 + $0x28] sm:$0xff]  ;;  %v687_v55 = vmov 1.0  }
  0x36   : > { %v467_v9 = vpack.c.bf16 %v189_v6, %v187_v5  ;;  %v194_v11 = vld [vmem:[#allocation2 + $0x38] sm:$0xff]  ;;  %v191_v12 = vld [vmem:[#allocation2 + $0x20] sm:$0xff]  ;;  %303 = vmatprep.mubr.f32.mxu1 %v686_v7  ;;  %v193_v14 = vld [vmem:[#allocation2 + $0x30] sm:$0xff]  ;;  %v220_v53 = vand.u32 127, %v219_v52  ;;  %s162_s24 = sand.u32 1, %s672_s10   ;;  %p874_p6 = scmp.ne.s32.totalorder %s867_s19, 0 }
  0x37   : > { %s171_s16 = scalar_select %p170_p5, %s790_s14, 2  ;;  %v469_v13 = vpack.c.bf16 %v194_v11, %v192_v10  ;;  %v196_v15 = vld [vmem:[#allocation2 + $0x48] sm:$0xff]  ;;  %v198_v16 = vld [vmem:[#allocation2 + $0x58] sm:$0xff]  ;;  %466 = vmatprep.subr.bf16.mxu0 %v465_v8  ;;  %497 = vmatprep.subr.bf16.mxu1 %v465_v8  ;;  %v471_v17 = vpack.c.bf16 %v193_v14, %v191_v12  ;;  %v195_v19 = vld [vmem:[#allocation2 + $0x40] sm:$0xff] }
  0x38   : > { %468 = vmatpush1.bf16.msra.mxu0 %v467_v9  ;;  %505 = vmatpush1.bf16.msra.mxu1 %v467_v9  ;;  %v473_v18 = vpack.c.bf16 %v198_v16, %v196_v15  ;;  %v197_v20 = vld [vmem:[#allocation2 + $0x50] sm:$0xff]  ;;  %v200_v21 = vld [vmem:[#allocation2 + $0x68] sm:$0xff]  ;;  %v202_v22 = vld [vmem:[#allocation2 + $0x78] sm:$0xff]  ;;  %s444_s25 = sshll.u32 %s162_s24, 5  ;;  %s802_s27 = scalar_lea.sflag [#allocation4], %s162_s24 }
  0x39   : > { %s446_s17 = sshll.u32 %s171_s16, 3  ;;  %470 = vmatprep.subr.bf16.mxu0 %v469_v13  ;;  %498 = vmatprep.subr.bf16.mxu1 %v469_v13  ;;  %v475_v23 = vpack.c.bf16 %v197_v20, %v195_v19  ;;  %v477_v24 = vpack.c.bf16 %v202_v22, %v200_v21  ;;  %v199_v25 = vld [vmem:[#allocation2 + $0x60] sm:$0xff]  ;;  %v201_v26 = vld [vmem:[#allocation2 + $0x70] sm:$0xff]  ;;  %v204_v27 = vld [vmem:[#allocation2 + $0x88] sm:$0xff]  ;;  %s164_s26 = scalar_lea.vmem [#allocation5], %s444_s25 }
  0x3a   : > { %s173_s21 = scalar_lea.vmem %s862_s0, %s446_s17  ;;  %v206_v28 = vld [vmem:[#allocation2 + $0x98] sm:$0xff]  ;;  %v479_v29 = vpack.c.bf16 %v201_v26, %v199_v25  ;;  %v203_v31 = vld [vmem:[#allocation2 + $0x80] sm:$0xff]  ;;  %v205_v32 = vld [vmem:[#allocation2 + $0x90] sm:$0xff]  ;;  %s351_s28 = ssub.s32 (%p874_p6), 3, %s790_s14 }
  0x3b   : > { %v185_v1 = vld [vmem:[%s173_s21] sm:$0xff]  ;;  %v186_v2 = vld [vmem:[%s173_s21 + $0x8] sm:$0xff]  ;;  %v481_v30 = vpack.c.bf16 %v206_v28, %v204_v27  ;;  %v210_v34 = vld [vmem:[#allocation2 + $0xb8] sm:$0xff]  ;;  %v483_v35 = vpack.c.bf16 %v205_v32, %v203_v31  ;;  %p352_p9 = scmp.lt.s32.totalorder (%p874_p6), %s351_s28, 2 }
  0x3c   : > { %222 = vperm.xlu0 %569, %v185_v1   ;;  %472 = vmatpush1.bf16.msra.mxu0 %v471_v17  ;;  %v208_v33 = vld [vmem:[#allocation2 + $0xa8] sm:$0xff]  ;;  %v207_v37 = vld [vmem:[#allocation2 + $0xa0] sm:$0xff]  ;;  %v209_v38 = vld [vmem:[#allocation2 + $0xb0] sm:$0xff] }
  0x3d   : > { %474 = vmatprep.subr.bf16.mxu0 %v473_v18  ;;  %506 = vmatpush1.bf16.msra.mxu1 %v471_v17  ;;  %v485_v36 = vpack.c.bf16 %v210_v34, %v208_v33  ;;  %v212_v39 = vld [vmem:[#allocation2 + $0xc8] sm:$0xff]  ;;  %v214_v40 = vld [vmem:[#allocation2 + $0xd8] sm:$0xff]  ;;  %v487_v41 = vpack.c.bf16 %v209_v38, %v207_v37  ;;  %v211_v43 = vld [vmem:[#allocation2 + $0xc0] sm:$0xff] }
  0x3e   : > { %499 = vmatprep.subr.bf16.mxu1 %v473_v18  ;;  %v489_v42 = vpack.c.bf16 %v214_v40, %v212_v39  ;;  %v213_v44 = vld [vmem:[#allocation2 + $0xd0] sm:$0xff]  ;;  %v216_v45 = vld [vmem:[#allocation2 + $0xe8] sm:$0xff]  ;;  %v218_v46 = vld [vmem:[#allocation2 + $0xf8] sm:$0xff] }
  0x3f   : > { %v491_v47 = vpack.c.bf16 %v213_v44, %v211_v43  ;;  %v493_v48 = vpack.c.bf16 %v218_v46, %v216_v45  ;;  %v215_v49 = vld [vmem:[#allocation2 + $0xe0] sm:$0xff]  ;;  %v217_v50 = vld [vmem:[#allocation2 + $0xf0] sm:$0xff] }
  0x40   : > { %225 = vperm.xlu0 %569, %v186_v2   ;;  %476 = vmatpush1.bf16.msra.mxu0 %v475_v23  ;;  %v495_v51 = vpack.c.bf16 %v217_v50, %v215_v49 }
  0x41   : > { %478 = vmatprep.subr.bf16.mxu0 %v477_v24  ;;  %507 = vmatpush1.bf16.msra.mxu1 %v475_v23 }
  0x42   : > { %500 = vmatprep.subr.bf16.mxu1 %v477_v24 }
  0x44   : > { %480 = vmatpush1.bf16.msra.mxu0 %v479_v29 }
  0x45   : > { %482 = vmatprep.subr.bf16.mxu0 %v481_v30  ;;  %508 = vmatpush1.bf16.msra.mxu1 %v479_v29 }
  0x46   : > { %501 = vmatprep.subr.bf16.mxu1 %v481_v30 }
  0x48   : > { %484 = vmatpush1.bf16.msra.mxu0 %v483_v35 }
  0x49   : > { %486 = vmatprep.subr.bf16.mxu0 %v485_v36  ;;  %509 = vmatpush1.bf16.msra.mxu1 %v483_v35 }
  0x4a   : > { %502 = vmatprep.subr.bf16.mxu1 %v485_v36 }
  0x4c   : > { %488 = vmatpush1.bf16.msra.mxu0 %v487_v41 }
  0x4d   : > { %490 = vmatprep.subr.bf16.mxu0 %v489_v42  ;;  %510 = vmatpush1.bf16.msra.mxu1 %v487_v41 }
  0x4e   : > { %503 = vmatprep.subr.bf16.mxu1 %v489_v42 }
  0x50   : > { %492 = vmatpush1.bf16.msra.mxu0 %v491_v47 }
  0x51   : > { %494 = vmatprep.subr.bf16.mxu0 %v493_v48  ;;  %511 = vmatpush1.bf16.msra.mxu1 %v491_v47 }
  0x52   : > { %504 = vmatprep.subr.bf16.mxu1 %v493_v48 }
  0x54   : > { %496 = vmatpush1.bf16.msra.mxu0 %v495_v51 }
  0x55   : > { %512 = vmatpush1.bf16.msra.mxu1 %v495_v51 }
  0xbb   : > { %v223_v54 = vpop.permute.xlu0 %222 }
  0xbc   : > { %vm227_vm0 = vcmp.eq.s32.totalorder %v220_v53, %v223_v54 }
  0xbd   : > { %449 = vmatmul.mubr.msk.f32.vlgmr.msra.gmra.mrb[0].mxu0 %vm227_vm0, %v687_v55 }
  0xbf   : > { %v226_v56 = vpop.permute.xlu0 %225 }
  0xc0   : > { %vm228_vm1 = vcmp.eq.s32.totalorder %v220_v53, %v226_v56 }
  0xc1   : > { %450 = vmatmul.mubr.msk.f32.vlgmr.msra.gmra.mrb[0].mxu1 %vm228_vm1, %v687_v55 }
 0x190   : > { %v299_v57 = vpop.f32.mrb[0].mxu0 }
 0x191   : > { %v310_v58 = vsub.f32 0.0, %v299_v57  ;;  %v301_v59 = vpop.f32.mrb[1].mxu0 }
 0x192   : > { %v311_v60 = vsub.f32 0.0, %v301_v59 }
 0x193   : > { %v314_v61 = vmul.f32 1.442695, %v310_v58 }
 0x194   : > { %v316_v62 = vmul.f32 1.442695, %v311_v60  ;;  %v305_v63 = vpop.f32.mrb[0].mxu1 }
 0x195   : > { %570 = vpow2.f32 %v314_v61  ;;  %v312_v0 = vsub.f32 0.0, %v305_v63  ;;  %v307_v1 = vpop.f32.mrb[1].mxu1 }
 0x196   : > { %572 = vpow2.f32 %v316_v62  ;;  %v313_v2 = vsub.f32 0.0, %v307_v1 }
 0x197   : > { %v318_v3 = vmul.f32 1.442695, %v312_v0 }
 0x198   : > { %v320_v4 = vmul.f32 1.442695, %v313_v2 }
 0x199   : > { %574 = vpow2.f32 %v318_v3 }
 0x19a   : > { %576 = vpow2.f32 %v320_v4 }
 0x19f   : > { %v571_v5 = vpop.eup %570 }
 0x1a0   : > { %v573_v6 = vpop.eup %572  ;;  %v322_v7 = vadd.f32 1.0, %v571_v5 }
 0x1a1   : > { %v323_v8 = vadd.f32 1.0, %v573_v6 }
 0x1a2   : > { %578 = vrcp.f32 %v322_v7 }
 0x1a3   : > { %v575_v9 = vpop.eup %574  ;;  %580 = vrcp.f32 %v323_v8 }
 0x1a4   : > { %v577_v10 = vpop.eup %576  ;;  %v324_v11 = vadd.f32 1.0, %v575_v9 }
 0x1a5   : > { %v325_v12 = vadd.f32 1.0, %v577_v10 }
 0x1a6   : > { %582 = vrcp.f32 %v324_v11 }
 0x1a7   : > { %584 = vrcp.f32 %v325_v12 }
 0x1ac   : > { %v579_v13 = vpop.eup %578 }
 0x1ad   : > { %v581_v14 = vpop.eup %580  ;;  %v334_v15 = vmul.f32 %v579_v13, %v299_v57 }
 0x1ae   : > { %v335_v16 = vmul.f32 %v581_v14, %v301_v59  ;;  %349 = sbr.rel (!%p874_p6) target bundleno = 465 (0x1d1), region = 36 }
 0x1af   : > { %338 = vst [vmem:[%s164_s26] sm:$0xff] %v334_v15 }
 0x1b0   : > { %v583_v17 = vpop.eup %582  ;;  %339 = vst [vmem:[%s164_s26 + $0x8] sm:$0xff] %v335_v16 }
 0x1b1   : > { %v585_v18 = vpop.eup %584  ;;  %v336_v19 = vmul.f32 %v583_v17, %v305_v63 }
 0x1b2   : > { %v337_v20 = vmul.f32 %v585_v18, %v307_v1 }
 0x1b3   : > { %340 = vst [vmem:[%s164_s26 + $0x10] sm:$0xff] %v336_v19 }
 0x1b4   : > { %341 = vst [vmem:[%s164_s26 + $0x18] sm:$0xff] %v337_v20 }
 0x1b5   : > { %s881_s28 = smov (!%p352_p9, %s351_s28), 2 }
 0x1b6   : > { %s807_s29 = sshll.u32 %s881_s28, 8 }
 0x1b7   : > { %s357_s30 = ssub.s32 512, %s807_s29 }
 0x1b8   : > { %358 = vsyncadd %s802_s27, %s357_s30  ;;  %p455_p10 = scmp.ne.s32.totalorder %s807_s29, 0  ;;  %s464_s3 = sshll.u32 %s727_s13, 9 }
 0x1b9   : > { %s816_s19 = scalar_lea.hbm %s864_s2, %s464_s3  ;;  %s364_s6 = sshll.u32 %s164_s26, 4  ;;  %s818_s6 = int_to_ptr.vmem [resolvable:$true] %s364_s6 }
 0x1ba   : > { %s614_s7 = scalar_lea.vmem %s818_s6, %s807_s29  ;;  %s688_s8 = smov [#allocation5]  }
 0x1bb   : > { %p615_p12 = scmp.ne.s32.totalorder %s818_s6, %s614_s7  ;;  %s618_s14 = sshll.u32 %s688_s8, 4  ;;  %s619_s14 = int_to_ptr.vmem [resolvable:$false] %s618_s14 }
 0x1bc   : > { %s620_s13 = scalar_lea.vmem %s619_s14, 1024  ;;  %p621_p4 = scmp.lt.s32.totalorder %s818_s6, %s619_s14 }
 0x1bd   : > { %p616_p2 = pnand %p615_p12, %p455_p10  ;;  %p622_p7 = scmp.lt.s32.totalorder %s620_s13, %s614_s7 }
 0x1bf   : > { %p617_p3 = pneg %p616_p2  ;;  %p623_p8 = por %p622_p7, %p621_p4 }
 0x1c1   : > { %p624_p11 = pnand %p623_p8, %p617_p3 }
 0x1c3   : > { %627 = shalt.err (!%p624_p11)
}
 0x1c4   : > { %s628_s16 = scalar_lea.hbm %s816_s19, %s807_s29  ;;  %s632_s23 = scalar_lea.hbm %s864_s2, 768 }
 0x1c5   : > { %p629_p13 = scmp.ne.s32.totalorder %s816_s19, %s628_s16  ;;  %p633_p5 = scmp.lt.u32.totalorder %s816_s19, %s864_s2 }
 0x1c6   : > { %p634_p6 = scmp.lt.u32.totalorder %s632_s23, %s628_s16  ;;  %p636_p12 = scmp.lt.u32.totalorder %s628_s16, %s816_s19 }
 0x1c7   : > { %p630_p1 = pnand %p629_p13, %p455_p10 }
 0x1c8   : > { %p635_p9 = por %p634_p6, %p633_p5 }
 0x1c9   : > { %p631_p0 = pneg %p630_p1 }
 0x1ca   : > { %p637_p2 = por %p636_p12, %p635_p9 }
 0x1cc   : > { %p638_p3 = pnand %p637_p2, %p631_p0 }
 0x1ce   : > { %641 = shalt.err (!%p638_p3)
}
 0x1cf   : > { %s689_s25 = smov 256   ;;  %s690_s26 = smov 16  }
 0x1d0   : > { %370 = dma.vmem_to_hbm [thread:$0]  (%p455_p10), %s818_s6, %s807_s29, %s816_s19, %s802_s27, %s689_s25, %s689_s25, %s690_s26  }
 0x1d1 PF: > { %p528_p4 = scmp.ge.s32.totalorder %s680_s12, 2  ;;  %s379_s28 = sand.u32 1, %s668_s9  }
 0x1d2   : > { %p875_p7 = scmp.ne.s32.totalorder %s868_s20, 0  ;;  %s380_s30 = scalar_lea.sflag [#allocation4], %s379_s28 }
 0x1d4   : > { %p523_p8 = pnand %p528_p4, %p875_p7 }
 0x1d6   : > { %663 = dma.done.wait (!%p523_p8), %s380_s30, 512  }
 0x1d7   : > { %665 = vsyncadd (!%p523_p8), %s380_s30, 4294966784  ;;  %p13_p11 = scmp.ge.s32.totalorder %s731_s15, 4   ;;  %s876_s9 = smov %s672_s10 }
 0x1d8   : > { %s877_s10 = smov %s676_s11  ;;  %s878_s11 = smov %s742_s18 }
 0x1d9   : > { %s879_s12 = smov %s731_s15  ;;  %15 = sbr.rel (!%p13_p11) target bundleno = 4 (0x4), region = 68 }
 0x1e0   :  { %385 = vsyncpa [#allocation3], 1 }
 0x1e1   :  { %387 = vsyncpa [#allocation3 + $0x1], 1 }
 0x1e2   :  { %388 = vsyncpa [#allocation4], 1 }
 0x1e3   :  { %390 = vsyncpa [#allocation4 + $0x1], 1 }

</bundles_post_ra>
